<compile_context>
chip_gen: v6e
topology: v6e:2x2x1
jax: 0.10.0
libtpu: 0.0.40
codegen_flags: <defaults>
</compile_context>

<pallas_src>
import math

import jax
import jax.numpy as jnp
from jax.experimental import pallas as pl
from jax.experimental.pallas import tpu as pltpu


def _round_up(a, b):
    return (a + b - 1) // b * b


def _vmem_budgets():
    """(double-buffered x+out tile budget, vmem_limit_bytes) per TPU generation."""
    kind = ""
    try:
        kind = jax.devices()[0].device_kind.lower()
    except Exception:
        pass
    if "v5 lite" in kind or "v5e" in kind:
        return 16 << 20, 40 << 20   # 128 MiB physical VMEM; raise 16 MiB scoped default
    if "v6" in kind:
        return 24 << 20, 48 << 20   # 128 MiB physical VMEM; lots of headroom
    if "v7" in kind or "7x" in kind:
        return 20 << 20, 40 << 20   # 64 MiB physical per TC; stay well under it
    return 8 << 20, None            # unknown gen: fit under every default scoped limit


def _spatial_encoding_kernel(x_ref, w_ref, b_ref, o_ref):
    # x_ref: (tm, Kp), w_ref: (Kp, tn), b_ref: (1, tn), o_ref: (tm, tn)
    acc = jnp.dot(x_ref[...], w_ref[...], preferred_element_type=jnp.float32)
    o_ref[...] = (acc + b_ref[...]).astype(o_ref.dtype)


def spatial_encoding(x, weight, bias, *, max_tile_rows=4096):
    """SpatialEncoding forward: x @ weight.T + bias.

    x: (..., 5); weight: (D, 5) (PyTorch layout); bias: (D,).
    Returns (..., D) in x.dtype (f32 accumulation on the MXU).
    """
    lead_shape = x.shape[:-1]
    Kin = x.shape[-1]
    D = weight.shape[0]
    assert weight.shape == (D, Kin)
    out_dtype = x.dtype

    x2d = x.reshape(-1, Kin)
    M = x2d.shape[0]

    # ---- lane-dense output packing ----------------------------------------
    # Mode A: pack k rows per output slab with a block-diagonal weight so the
    #         output last dim (k*D) is a multiple of 128 -> unmasked vst.
    # Mode B: if that weight would be too big, keep k=1 and zero-pad the
    #         output lanes up to round_up(D, 128) instead (still unmasked vst).
    w_itemsize = jnp.dtype(weight.dtype).itemsize
    k = 128 // math.gcd(D, 128)
    if k > 1 and (k * Kin) * (k * D) * w_itemsize > (2 << 20):
        k = 1
        Np = _round_up(D, 128)
        lane_pad = Np - D
    else:
        Np = k * D
        lane_pad = 0
    Kp = k * Kin

    # ---- packed parameters (weight keeps its own dtype, bias stays f32) ----
    w_t = weight.T                                             # (Kin, D)
    if k > 1:
        w_packed = jax.scipy.linalg.block_diag(*([w_t] * k))   # (Kp, Np)
        b_packed = jnp.tile(bias.reshape(1, D).astype(jnp.float32), (1, k))
    elif lane_pad:
        w_packed = jnp.pad(w_t, ((0, 0), (0, lane_pad)))
        b_packed = jnp.pad(bias.astype(jnp.float32), (0, lane_pad)).reshape(1, Np)
    else:
        w_packed = w_t
        b_packed = bias.astype(jnp.float32).reshape(1, Np)

    # ---- row packing: only pad M up to a multiple of k (<= k-1 rows) --------
    row_pad = (-M) % k
    if row_pad:
        x2d = jnp.pad(x2d, ((0, row_pad), (0, 0)))
    Mp = (M + row_pad) // k
    x_packed = x2d.reshape(Mp, Kp)

    # ---- tiling -------------------------------------------------------------
    x_itemsize = jnp.dtype(x.dtype).itemsize
    o_itemsize = jnp.dtype(out_dtype).itemsize
    sub = 8 * max(1, 4 // min(x_itemsize, o_itemsize))   # 8 (f32) / 16 (bf16) / 32 (i8)

    tn = min(Np, 1024)                                   # lane tile (multiple of 128)

    tile_budget, vmem_limit = _vmem_budgets()
    bytes_per_row = _round_up(Kp, 128) * x_itemsize + tn * o_itemsize
    tm = tile_budget // (2 * bytes_per_row)              # double-buffered x + out
    tm = max(sub, min(max_tile_rows, (tm // sub) * sub))

    # Keep enough M-tiles for pipelining and for v7x's 2 TensorCores.
    min_m_tiles = 8 if Mp >= 8 * 512 else 2
    tm = min(tm, max(sub, _round_up(pl.cdiv(Mp, min_m_tiles), sub)))
    if tm >= Mp:
        tm = Mp                                          # single full block is allowed
    gm = pl.cdiv(Mp, tm)
    gn = pl.cdiv(Np, tn)

    cp_kwargs = dict(dimension_semantics=("parallel", "parallel"))
    if vmem_limit is not None:
        cp_kwargs["vmem_limit_bytes"] = int(vmem_limit)

    out_packed = pl.pallas_call(
        _spatial_encoding_kernel,
        out_shape=jax.ShapeDtypeStruct((Mp, Np), out_dtype),
        grid=(gm, gn),
        in_specs=[
            pl.BlockSpec((tm, Kp), lambda i, j: (i, 0)),   # x streamed over M, resident over N
            pl.BlockSpec((Kp, tn), lambda i, j: (0, j)),   # weight (small, N-tiled)
            pl.BlockSpec((1, tn), lambda i, j: (0, j)),    # bias
        ],
        out_specs=pl.BlockSpec((tm, tn), lambda i, j: (i, j)),
        compiler_params=pltpu.CompilerParams(**cp_kwargs),
    )(x_packed, w_packed, b_packed)

    # ---- unpack (no-ops / tiny slices only) --------------------------------
    if k > 1:
        out2d = out_packed.reshape(Mp * k, D)
        if row_pad:
            out2d = out2d[:M]
    else:
        out2d = out_packed
        if lane_pad:
            out2d = out2d[:, :D]
    return out2d.reshape(*lead_shape, D)


def _check(key, lead_shape, embed_dim, in_feat=5):
    k_x, k_w, k_b = jax.random.split(key, 3)
    bound = 1.0 / jnp.sqrt(jnp.float32(in_feat))
    weight = jax.random.uniform(k_w, (embed_dim, in_feat), jnp.float32, -bound, bound)
    bias = jax.random.uniform(k_b, (embed_dim,), jnp.float32, -bound, bound)
    x = jax.random.uniform(k_x, (*lead_shape, in_feat), jnp.float32)

    out = jax.block_until_ready(spatial_encoding(x, weight, bias))
    ref = x @ weight.T + bias
    assert out.shape == (*lead_shape, embed_dim)
    assert jnp.allclose(out, ref, atol=1e-5, rtol=1e-5), (
        f"mismatch vs reference for lead={lead_shape}, D={embed_dim}")


if __name__ == "__main__":
    key = jax.random.PRNGKey(0)
    keys = jax.random.split(key, 4)

    # 1) Canonical module shapes: (batch=2, seq=8, 5) -> embed_dim=32 (row-packed, k=4).
    _check(keys[0], (2, 8), 32)
    # 2) M not a multiple of k + multi-tile M with ragged last block.
    _check(keys[1], (7, 11), 32)
    # 3) Odd embed dim -> lane-pad fallback path (zero weight/bias columns).
    _check(keys[2], (2, 8), 33)
    # 4) Larger embed dim -> k=16 block-diagonal packing + N-axis tiling (gn > 1).
    _check(keys[3], (2, 8), 200)

    print("KERNEL_OK")
</pallas_src>

<mosaic_0001>
module attributes {stable_mosaic.version = 11 : i64} {
  func.func @_spatial_encoding_kernel(%arg0: i32, %arg1: i32, %arg2: memref<4x20xf32, #tpu.memory_space<vmem>>, %arg3: memref<20x128xf32, #tpu.memory_space<vmem>>, %arg4: memref<1x128xf32, #tpu.memory_space<vmem>>, %arg5: memref<4x128xf32, #tpu.memory_space<vmem>>) attributes {dimension_semantics = [#tpu.dimension_semantics<parallel>, #tpu.dimension_semantics<parallel>], iteration_bounds = array<i64: 1, 1>, scalar_prefetch = 0 : i64, scratch_operands = 0 : i64, tpu.core_type = #tpu.core_type<tc>, window_params = [{transform_indices = @transform_0, window_bounds = array<i64: 4, 20>}, {transform_indices = @transform_1, window_bounds = array<i64: 20, 128>}, {transform_indices = @transform_2, window_bounds = array<i64: 1, 128>}, {transform_indices = @transform_3, window_bounds = array<i64: 4, 128>}]} {
    %c0 = arith.constant 0 : index
    %c0_0 = arith.constant 0 : index
    %0 = vector.load %arg2[%c0, %c0_0] : memref<4x20xf32, #tpu.memory_space<vmem>>, vector<4x20xf32>
    %c0_1 = arith.constant 0 : index
    %c0_2 = arith.constant 0 : index
    %1 = vector.load %arg3[%c0_1, %c0_2] : memref<20x128xf32, #tpu.memory_space<vmem>>, vector<20x128xf32>
    %cst = arith.constant dense<0.000000e+00> : vector<4x128xf32>
    %2 = tpu.matmul %0, %1, %cst {dimension_numbers = #tpu.dot_dimension_numbers<[1], [0], [0], [1], [0, 0, 1, 1], [], []>} : vector<4x20xf32>, vector<20x128xf32>, vector<4x128xf32> -> vector<4x128xf32>
    %c0_3 = arith.constant 0 : index
    %c0_4 = arith.constant 0 : index
    %3 = vector.load %arg4[%c0_3, %c0_4] : memref<1x128xf32, #tpu.memory_space<vmem>>, vector<1x128xf32>
    %4 = vector.broadcast %3 : vector<1x128xf32> to vector<4x128xf32>
    %5 = arith.addf %2, %4 : vector<4x128xf32>
    %c0_5 = arith.constant 0 : index
    %c0_6 = arith.constant 0 : index
    %6 = vector.load %arg5[%c0_5, %c0_6] : memref<4x128xf32, #tpu.memory_space<vmem>>, vector<4x128xf32>
    tpu.vector_store %arg5[%c0_5, %c0_6], %5 {strides = array<i32>} : memref<4x128xf32, #tpu.memory_space<vmem>>, vector<4x128xf32>,
    return
  }
  func.func @transform_0(%arg0: i32, %arg1: i32) -> (i32, i32) {
    %c0_i32 = arith.constant 0 : i32
    %c0_i32_0 = arith.constant 0 : i32
    return %arg0, %c0_i32 : i32, i32
  }
  func.func @transform_1(%arg0: i32, %arg1: i32) -> (i32, i32) {
    %c0_i32 = arith.constant 0 : i32
    %c0_i32_0 = arith.constant 0 : i32
    return %c0_i32, %arg1 : i32, i32
  }
  func.func @transform_2(%arg0: i32, %arg1: i32) -> (i32, i32) {
    %c0_i32 = arith.constant 0 : i32
    %c0_i32_0 = arith.constant 0 : i32
    return %c0_i32, %arg1 : i32, i32
  }
  func.func @transform_3(%arg0: i32, %arg1: i32) -> (i32, i32) {
    %c0_i32 = arith.constant 0 : i32
    return %arg0, %arg1 : i32, i32
  }
}

</mosaic_0001>

<bundles_post_ra>
// kernel: tpu_custom_call.1
= control target key start
LH: loop header
LB: loop body
LE: loop exit
PB: predicated region body
PF: predicated region fallthrough
CT: control target
= control target key end

     0   :  { %8 = vsyncpa [#allocation3], 0  ;;  %s275_s0 = inlined_call_operand.hbm [shape: f32[4,20], index: 0, kind: input, shape index: {}]   ;;  %s276_s1 = inlined_call_operand.hbm [shape: f32[20,128], index: 1, kind: input, shape index: {}]   ;;  %s277_s2 = inlined_call_operand.vmem [shape: f32[1,128], index: 2, kind: input, shape index: {}]   ;;  %s278_s3 = inlined_call_operand.hbm [shape: f32[4,128], index: 3, kind: output, shape index: {}]  }
   0x1   :  { %9 = vsyncpa [#allocation6], 0 }
   0x2   :  { %10 = vsyncpa [#allocation4], 0  ;;  %s236_s12 = smov [#allocation2]   ;;  %s237_s14 = smov [#allocation5]  }
   0x3   :  { %s17_s13 = sshll.u32 %s236_s12, 4  ;;  %s26_s15 = sshll.u32 %s237_s14, 4  ;;  %s18_s13 = int_to_ptr.vmem [resolvable:$true] %s17_s13  ;;  %s27_s15 = int_to_ptr.vmem [resolvable:$true] %s26_s15 }
   0x4   :  { %s178_s16 = scalar_lea.vmem %s18_s13, 64  ;;  %p183_p1 = scmp.lt.s32.totalorder %s18_s13, %s18_s13 }
   0x5   :  { %p179_p0 = scmp.ne.s32.totalorder %s18_s13, %s178_s16  ;;  %p184_p2 = scmp.lt.s32.totalorder %s178_s16, %s178_s16 }
   0x7   :  { %p185_p3 = por %p184_p2, %p183_p1 }
   0x9   :  { %p186_p4 = pnand %p185_p3, %p179_p0 }
   0xb   :  { %189 = shalt.err (!%p186_p4)
}
   0xc   :  { %20 = dma.hbm_to_vmem [thread:$0]  %s275_s0, 64, %s18_s13, [#allocation3]  }
   0xd   :  { %s198_s19 = scalar_lea.vmem %s27_s15, 384  ;;  %p203_p6 = scmp.lt.s32.totalorder %s27_s15, %s27_s15 }
   0xe   :  { %p199_p5 = scmp.ne.s32.totalorder %s27_s15, %s198_s19  ;;  %p204_p7 = scmp.lt.s32.totalorder %s198_s19, %s198_s19 }
  0x10   :  { %p205_p8 = por %p204_p7, %p203_p6 }
  0x12   :  { %p206_p9 = pnand %p205_p8, %p199_p5 }
  0x14   :  { %209 = shalt.err (!%p206_p9)
}
  0x15   :  { %s238_s20 = smov 128   ;;  %s239_s21 = smov 8  }
  0x16   :  { %32 = dma.hbm_to_vmem [thread:$0]  %s276_s1, 384, %s27_s15, [#allocation6], %s238_s20, %s238_s20, %s239_s21  }
  0x17   :  { %230 = dma.done.wait [#allocation3], 64  }
  0x18   :  { %231 = vsyncadd [#allocation3], 4294967232 }
  0x19   :  { %232 = dma.done.wait [#allocation6], 384  }
  0x1a   :  { %233 = vsyncadd [#allocation6], 4294966912  ;;  %v240_v0 = vmov 0.0   ;;  %vm241_vm0 = vmmov 0   ;;  %vm56_vm1 = vcmask 1043456   ;;  %v43_v2 = vld [vmem:[#allocation5 + $0x8] sm:$0xff] }
  0x1b   :  { %154 = vmatprep.subr.mxu0 %v240_v0  ;;  %160 = vmatprep.mubr.msk.f32.mxu0 %vm241_vm0, %v240_v0  ;;  %v44_v1 = vld [vmem:[#allocation5 + $0x10] sm:$0xf]  ;;  %v42_v3 = vld [vmem:[#allocation5] sm:$0xff]  ;;  %v41_v4 = vld [vmem:[#allocation2] sm:$0xf]  ;;  %vm52_vm2 = vcmask 162816  }
  0x1c   :  { %155 = vmatpush3.msk.msra.mxu0 %vm56_vm1, %v44_v1  ;;  %v147_v5 = vld [vmem:[%s277_s2] ss:$0 sm:$0xff]  ;;  %s242_s24 = smov [#allocation7]  }
  0x1d   :  { %156 = vmatprep.subr.mxu0 %v240_v0  ;;  %s137_s25 = sshll.u32 %s242_s24, 4  ;;  %s138_s25 = int_to_ptr.vmem [resolvable:$true] %s137_s25 }
  0x1e   :  { %157 = vmatpush3.msra.mxu0 %v43_v2  ;;  %s210_s26 = scalar_lea.vmem %s138_s25, 64  ;;  %p215_p11 = scmp.lt.s32.totalorder %s138_s25, %s138_s25 }
  0x1f   :  { %158 = vmatprep.subr.mxu0 %v240_v0  ;;  %p211_p10 = scmp.ne.s32.totalorder %s138_s25, %s210_s26  ;;  %p216_p12 = scmp.lt.s32.totalorder %s210_s26, %s210_s26 }
  0x20   :  { %159 = vmatpush3.msra.mxu0 %v42_v3 }
  0x21   :  { %161 = vmatmul.mubr.msk.f32.vlgmr.msra.gmra.mxu0 %vm52_vm2, %v41_v4  ;;  %p217_p13 = por %p216_p12, %p215_p11 }
  0x23   :  { %p218_p0 = pnand %p217_p13, %p211_p10 }
  0xe1   :  { %v126_v6 = vpop.f32.mrf.mxu0 }
  0xe2   :  { %v127_v7 = vadd.f32 %v147_v5, %v126_v6 }
  0xe3   :  { %v162_v8 = vpop.f32.mrf.mxu0 }
  0xe4   :  { %130 = vst [vmem:[#allocation7] sm:$0xf] %v127_v7 }
  0xe5   :  { %221 = shalt.err (!%p218_p0)
}
  0xe6   :  { %140 = dma.vmem_to_hbm [thread:$0]  %s138_s25, 64, %s278_s3, [#allocation4]  }
  0xe7   :  { %234 = dma.done.wait [#allocation4], 64  }
  0xe8   :  { %235 = vsyncadd [#allocation4], 4294967232 }
  0xe9   :  { %144 = vsyncpa [#allocation3], 1 }
  0xea   :  { %145 = vsyncpa [#allocation6], 1 }
  0xeb   :  { %146 = vsyncpa [#allocation4], 1 }

</bundles_post_ra>
